<compile_context>
chip_gen: v7x
topology: tpu7x:2x2x1
jax: 0.10.0
libtpu: 0.0.40
codegen_flags: <defaults>
</compile_context>

<pallas_src>
import math

import jax
import jax.numpy as jnp
from jax.experimental import pallas as pl
from jax.experimental.pallas import tpu as pltpu


def _round_up(n, m):
    return ((n + m - 1) // m) * m


def _pad_to(a, shape):
    pads = [(0, t - s) for s, t in zip(a.shape, shape)]
    if all(p == (0, 0) for p in pads):
        return a
    return jnp.pad(a, pads)


def _lgnj_train_kernel(x_ref, eps_z_ref, eps_out_ref,
                       z_mu_ref, z_std_ref,
                       w_mu_t_ref, w_var_t_ref,
                       b_mu_ref, b_var_ref,
                       o_ref):
    """Training-mode tile:  (TB, In) x (In, TN) -> (TB, TN).

    Refs (per grid step (i, j)):
      x_ref        (TB, In)
      eps_z_ref    (TB, In)   ~ N(0,1)
      eps_out_ref  (TB, TN)   ~ N(0,1)
      z_mu_ref     (1, In)
      z_std_ref    (1, In)    = exp(0.5 * z_logvar)      (precomputed)
      w_mu_t_ref   (In, TN)   = weight_mu.T tile
      w_var_t_ref  (In, TN)   = exp(weight_logvar).T tile (precomputed)
      b_mu_ref     (1, TN)
      b_var_ref    (1, TN)    = exp(bias_logvar)          (precomputed)
      o_ref        (TB, TN)
    """
    z = z_mu_ref[...] + eps_z_ref[...] * z_std_ref[...]          # (TB, In)
    xz = x_ref[...] * z                                          # (TB, In)

    mu_act = jnp.dot(xz, w_mu_t_ref[...],
                     preferred_element_type=jnp.float32) + b_mu_ref[...]
    var_act = jnp.dot(xz * xz, w_var_t_ref[...],
                      preferred_element_type=jnp.float32) + b_var_ref[...]

    # reparametrize(mu_act, log(var_act)):  std = sqrt(var_act)
    o_ref[...] = (mu_act + eps_out_ref[...] * jnp.sqrt(var_act)).astype(o_ref.dtype)


def _lgnj_eval_kernel(x_ref, z_mu_ref, w_mu_t_ref, b_mu_ref, o_ref):
    """Eval-mode tile: mean activations only, no eps / variance traffic."""
    xz = x_ref[...] * z_mu_ref[...]
    o_ref[...] = (jnp.dot(xz, w_mu_t_ref[...],
                          preferred_element_type=jnp.float32)
                  + b_mu_ref[...]).astype(o_ref.dtype)


def linear_group_nj_forward(x, params, eps_z=None, eps_out=None, *,
                            training=True, tb=None, tn=128):
    """Pallas-backed LinearGroupNJ.forward (non-deterministic branch)."""
    B, In = x.shape
    Out = params["weight_mu"].shape[0]

    assert tn % 128 == 0, "out-tile must be lane-dense (multiple of 128)"
    if tb is None:
        # One big MXU-aligned batch tile; single tile if batch is small.
        tb = _round_up(B, 8) if B <= 128 else 128
    tb = _round_up(tb, 8)

    Bp = _round_up(B, tb)
    Out_p = _round_up(Out, tn)

    f32 = jnp.float32
    # ---- one-time wrapper-side precompute (hoisted out of the grid loop) ----
    w_mu_t = _pad_to(params["weight_mu"].astype(f32).T, (In, Out_p))   # (In, Out_p)
    b_mu = _pad_to(params["bias_mu"].astype(f32).reshape(1, Out), (1, Out_p))
    z_mu = params["z_mu"].astype(f32).reshape(1, In)
    x_p = _pad_to(x.astype(f32), (Bp, In))

    grid = (Bp // tb, Out_p // tn)
    cparams = pltpu.CompilerParams(
        dimension_semantics=("parallel", "parallel"),
        vmem_limit_bytes=32 * 1024 * 1024)
    out_shape = jax.ShapeDtypeStruct((Bp, Out_p), f32)
    out_spec = pl.BlockSpec((tb, tn), lambda i, j: (i, j))

    if training:
        assert eps_z is not None and eps_out is not None
        w_var_t = _pad_to(jnp.exp(params["weight_logvar"].astype(f32)).T, (In, Out_p))
        b_var = _pad_to(jnp.exp(params["bias_logvar"].astype(f32)).reshape(1, Out),
                        (1, Out_p))
        z_std = jnp.exp(0.5 * params["z_logvar"].astype(f32)).reshape(1, In)
        eps_z_p = _pad_to(eps_z.astype(f32), (Bp, In))
        eps_out_p = _pad_to(eps_out.astype(f32), (Bp, Out_p))

        out = pl.pallas_call(
            _lgnj_train_kernel,
            out_shape=out_shape,
            grid_spec=pltpu.PrefetchScalarGridSpec(
                num_scalar_prefetch=0,
                grid=grid,
                in_specs=[
                    pl.BlockSpec((tb, In), lambda i, j: (i, 0)),   # x
                    pl.BlockSpec((tb, In), lambda i, j: (i, 0)),   # eps_z
                    pl.BlockSpec((tb, tn), lambda i, j: (i, j)),   # eps_out
                    pl.BlockSpec((1, In), lambda i, j: (0, 0)),    # z_mu
                    pl.BlockSpec((1, In), lambda i, j: (0, 0)),    # z_std
                    pl.BlockSpec((In, tn), lambda i, j: (0, j)),   # weight_mu^T tile
                    pl.BlockSpec((In, tn), lambda i, j: (0, j)),   # exp(weight_logvar)^T tile
                    pl.BlockSpec((1, tn), lambda i, j: (0, j)),    # bias_mu
                    pl.BlockSpec((1, tn), lambda i, j: (0, j)),    # exp(bias_logvar)
                ],
                out_specs=out_spec,
            ),
            compiler_params=cparams,
        )(x_p, eps_z_p, eps_out_p, z_mu, z_std, w_mu_t, w_var_t, b_mu, b_var)
    else:
        out = pl.pallas_call(
            _lgnj_eval_kernel,
            out_shape=out_shape,
            grid_spec=pltpu.PrefetchScalarGridSpec(
                num_scalar_prefetch=0,
                grid=grid,
                in_specs=[
                    pl.BlockSpec((tb, In), lambda i, j: (i, 0)),   # x
                    pl.BlockSpec((1, In), lambda i, j: (0, 0)),    # z_mu
                    pl.BlockSpec((In, tn), lambda i, j: (0, j)),   # weight_mu^T tile
                    pl.BlockSpec((1, tn), lambda i, j: (0, j)),    # bias_mu
                ],
                out_specs=out_spec,
            ),
            compiler_params=cparams,
        )(x_p, z_mu, w_mu_t, b_mu)

    return out[:B, :Out]


def init_params(key, in_features, out_features):
    """Deterministic init mirroring LinearGroupNJ.reset_parameters."""
    ks = jax.random.split(key, 5)
    stdv = 1.0 / math.sqrt(in_features)
    return {
        "z_mu": 1.0 + 0.01 * jax.random.normal(ks[0], (in_features,), jnp.float32),
        "z_logvar": -9.0 + 0.01 * jax.random.normal(ks[1], (in_features,), jnp.float32),
        "weight_mu": stdv * jax.random.normal(ks[2], (out_features, in_features), jnp.float32),
        "weight_logvar": -9.0 + 0.01 * jax.random.normal(ks[3], (out_features, in_features), jnp.float32),
        "bias_mu": jnp.zeros((out_features,), jnp.float32),
        "bias_logvar": -9.0 + 0.01 * jax.random.normal(ks[4], (out_features,), jnp.float32),
    }


def reference_forward(x, params, eps_z, eps_out, training=True):
    """Pure-JAX reference of the PyTorch forward."""
    z_mu = params["z_mu"][None, :]
    if training:
        z = z_mu + eps_z * jnp.exp(0.5 * params["z_logvar"][None, :])
    else:
        z = jnp.broadcast_to(z_mu, x.shape)
    xz = x * z
    mu_act = xz @ params["weight_mu"].T + params["bias_mu"][None, :]
    if not training:
        return mu_act
    var_act = (xz ** 2) @ jnp.exp(params["weight_logvar"]).T \
        + jnp.exp(params["bias_logvar"])[None, :]
    return mu_act + eps_out * jnp.exp(0.5 * jnp.log(var_act))


if __name__ == "__main__":
    # Small but non-trivial: exercises batch tiling (tb=128 -> 2 batch tiles
    # with zero-padding 160 -> 256), Out padding/tiling (200 -> 256, 2 tiles).
    B, IN, OUT = 160, 96, 200

    key = jax.random.PRNGKey(0)
    k_param, k_x, k_ez, k_eo = jax.random.split(key, 4)

    params = init_params(k_param, IN, OUT)
    x = jax.random.normal(k_x, (B, IN), jnp.float32)
    eps_z = jax.random.normal(k_ez, (B, IN), jnp.float32)
    eps_out = jax.random.normal(k_eo, (B, OUT), jnp.float32)

    # training / sampling=True path
    out = jax.block_until_ready(
        linear_group_nj_forward(x, params, eps_z, eps_out, training=True, tb=128))
    ref = reference_forward(x, params, eps_z, eps_out, training=True)
    assert out.shape == (B, OUT)
    assert jnp.allclose(out, ref, atol=1e-4, rtol=1e-4), "train mismatch vs reference"

    # eval / sampling=False path: mean activations only (no eps inputs DMA'd)
    out_eval = jax.block_until_ready(
        linear_group_nj_forward(x, params, training=False, tb=128))
    ref_eval = reference_forward(x, params, eps_z, eps_out, training=False)
    assert jnp.allclose(out_eval, ref_eval, atol=1e-4, rtol=1e-4), "eval mismatch vs reference"

    print("KERNEL_OK")
</pallas_src>

<mosaic_0001>
module attributes {stable_mosaic.version = 11 : i64} {
  func.func @_lgnj_train_kernel(%arg0: i32, %arg1: i32, %arg2: memref<128x96xf32, #tpu.memory_space<vmem>>, %arg3: memref<128x96xf32, #tpu.memory_space<vmem>>, %arg4: memref<128x128xf32, #tpu.memory_space<vmem>>, %arg5: memref<1x96xf32, #tpu.memory_space<vmem>>, %arg6: memref<1x96xf32, #tpu.memory_space<vmem>>, %arg7: memref<96x128xf32, #tpu.memory_space<vmem>>, %arg8: memref<96x128xf32, #tpu.memory_space<vmem>>, %arg9: memref<1x128xf32, #tpu.memory_space<vmem>>, %arg10: memref<1x128xf32, #tpu.memory_space<vmem>>, %arg11: memref<128x128xf32, #tpu.memory_space<vmem>>) attributes {dimension_semantics = [#tpu.dimension_semantics<parallel>, #tpu.dimension_semantics<parallel>], iteration_bounds = array<i64: 2, 2>, scalar_prefetch = 0 : i64, scratch_operands = 0 : i64, tpu.core_type = #tpu.core_type<tc>, window_params = [{transform_indices = @transform_0, window_bounds = array<i64: 128, 96>}, {transform_indices = @transform_1, window_bounds = array<i64: 128, 96>}, {transform_indices = @transform_2, window_bounds = array<i64: 128, 128>}, {pipeline_mode = #tpu.pipeline_mode<synchronous>, transform_indices = @transform_3, window_bounds = array<i64: 1, 96>}, {pipeline_mode = #tpu.pipeline_mode<synchronous>, transform_indices = @transform_4, window_bounds = array<i64: 1, 96>}, {transform_indices = @transform_5, window_bounds = array<i64: 96, 128>}, {transform_indices = @transform_6, window_bounds = array<i64: 96, 128>}, {transform_indices = @transform_7, window_bounds = array<i64: 1, 128>}, {transform_indices = @transform_8, window_bounds = array<i64: 1, 128>}, {transform_indices = @transform_9, window_bounds = array<i64: 128, 128>}]} {
    %c0 = arith.constant 0 : index
    %c0_0 = arith.constant 0 : index
    %0 = vector.load %arg5[%c0, %c0_0] : memref<1x96xf32, #tpu.memory_space<vmem>>, vector<1x96xf32>
    %c0_1 = arith.constant 0 : index
    %c0_2 = arith.constant 0 : index
    %1 = vector.load %arg3[%c0_1, %c0_2] : memref<128x96xf32, #tpu.memory_space<vmem>>, vector<128x96xf32>
    %c0_3 = arith.constant 0 : index
    %c0_4 = arith.constant 0 : index
    %2 = vector.load %arg6[%c0_3, %c0_4] : memref<1x96xf32, #tpu.memory_space<vmem>>, vector<1x96xf32>
    %3 = vector.broadcast %2 : vector<1x96xf32> to vector<128x96xf32>
    %4 = arith.mulf %1, %3 : vector<128x96xf32>
    %5 = vector.broadcast %0 : vector<1x96xf32> to vector<128x96xf32>
    %6 = arith.addf %5, %4 : vector<128x96xf32>
    %c0_5 = arith.constant 0 : index
    %c0_6 = arith.constant 0 : index
    %7 = vector.load %arg2[%c0_5, %c0_6] : memref<128x96xf32, #tpu.memory_space<vmem>>, vector<128x96xf32>
    %8 = arith.mulf %7, %6 : vector<128x96xf32>
    %c0_7 = arith.constant 0 : index
    %c0_8 = arith.constant 0 : index
    %9 = vector.load %arg7[%c0_7, %c0_8] : memref<96x128xf32, #tpu.memory_space<vmem>>, vector<96x128xf32>
    %cst = arith.constant dense<0.000000e+00> : vector<128x128xf32>
    %10 = tpu.matmul %8, %9, %cst {dimension_numbers = #tpu.dot_dimension_numbers<[1], [0], [0], [1], [0, 0, 1, 1], [], []>} : vector<128x96xf32>, vector<96x128xf32>, vector<128x128xf32> -> vector<128x128xf32>
    %c0_9 = arith.constant 0 : index
    %c0_10 = arith.constant 0 : index
    %11 = vector.load %arg9[%c0_9, %c0_10] : memref<1x128xf32, #tpu.memory_space<vmem>>, vector<1x128xf32>
    %12 = vector.broadcast %11 : vector<1x128xf32> to vector<128x128xf32>
    %13 = arith.addf %10, %12 : vector<128x128xf32>
    %14 = arith.mulf %8, %8 : vector<128x96xf32>
    %c0_11 = arith.constant 0 : index
    %c0_12 = arith.constant 0 : index
    %15 = vector.load %arg8[%c0_11, %c0_12] : memref<96x128xf32, #tpu.memory_space<vmem>>, vector<96x128xf32>
    %cst_13 = arith.constant dense<0.000000e+00> : vector<128x128xf32>
    %16 = tpu.matmul %14, %15, %cst_13 {dimension_numbers = #tpu.dot_dimension_numbers<[1], [0], [0], [1], [0, 0, 1, 1], [], []>} : vector<128x96xf32>, vector<96x128xf32>, vector<128x128xf32> -> vector<128x128xf32>
    %c0_14 = arith.constant 0 : index
    %c0_15 = arith.constant 0 : index
    %17 = vector.load %arg10[%c0_14, %c0_15] : memref<1x128xf32, #tpu.memory_space<vmem>>, vector<1x128xf32>
    %18 = vector.broadcast %17 : vector<1x128xf32> to vector<128x128xf32>
    %19 = arith.addf %16, %18 : vector<128x128xf32>
    %c0_16 = arith.constant 0 : index
    %c0_17 = arith.constant 0 : index
    %20 = vector.load %arg4[%c0_16, %c0_17] : memref<128x128xf32, #tpu.memory_space<vmem>>, vector<128x128xf32>
    %21 = math.sqrt %19 : vector<128x128xf32>
    %22 = arith.mulf %20, %21 : vector<128x128xf32>
    %23 = arith.addf %13, %22 : vector<128x128xf32>
    %c0_18 = arith.constant 0 : index
    %c0_19 = arith.constant 0 : index
    %24 = vector.load %arg11[%c0_18, %c0_19] : memref<128x128xf32, #tpu.memory_space<vmem>>, vector<128x128xf32>
    tpu.vector_store %arg11[%c0_18, %c0_19], %23 {strides = array<i32>} : memref<128x128xf32, #tpu.memory_space<vmem>>, vector<128x128xf32>,
    return
  }
  func.func @transform_0(%arg0: i32, %arg1: i32) -> (i32, i32) {
    %c0_i32 = arith.constant 0 : i32
    %c0_i32_0 = arith.constant 0 : i32
    return %arg0, %c0_i32 : i32, i32
  }
  func.func @transform_1(%arg0: i32, %arg1: i32) -> (i32, i32) {
    %c0_i32 = arith.constant 0 : i32
    %c0_i32_0 = arith.constant 0 : i32
    return %arg0, %c0_i32 : i32, i32
  }
  func.func @transform_2(%arg0: i32, %arg1: i32) -> (i32, i32) {
    %c0_i32 = arith.constant 0 : i32
    return %arg0, %arg1 : i32, i32
  }
  func.func @transform_3(%arg0: i32, %arg1: i32) -> (i32, i32) {
    %c0_i32 = arith.constant 0 : i32
    %c0_i32_0 = arith.constant 0 : i32
    %c0_i32_1 = arith.constant 0 : i32
    return %c0_i32, %c0_i32_0 : i32, i32
  }
  func.func @transform_4(%arg0: i32, %arg1: i32) -> (i32, i32) {
    %c0_i32 = arith.constant 0 : i32
    %c0_i32_0 = arith.constant 0 : i32
    %c0_i32_1 = arith.constant 0 : i32
    return %c0_i32, %c0_i32_0 : i32, i32
  }
  func.func @transform_5(%arg0: i32, %arg1: i32) -> (i32, i32) {
    %c0_i32 = arith.constant 0 : i32
    %c0_i32_0 = arith.constant 0 : i32
    return %c0_i32, %arg1 : i32, i32
  }
  func.func @transform_6(%arg0: i32, %arg1: i32) -> (i32, i32) {
    %c0_i32 = arith.constant 0 : i32
    %c0_i32_0 = arith.constant 0 : i32
    return %c0_i32, %arg1 : i32, i32
  }
  func.func @transform_7(%arg0: i32, %arg1: i32) -> (i32, i32) {
    %c0_i32 = arith.constant 0 : i32
    %c0_i32_0 = arith.constant 0 : i32
    return %c0_i32, %arg1 : i32, i32
  }
  func.func @transform_8(%arg0: i32, %arg1: i32) -> (i32, i32) {
    %c0_i32 = arith.constant 0 : i32
    %c0_i32_0 = arith.constant 0 : i32
    return %c0_i32, %arg1 : i32, i32
  }
  func.func @transform_9(%arg0: i32, %arg1: i32) -> (i32, i32) {
    %c0_i32 = arith.constant 0 : i32
    return %arg0, %arg1 : i32, i32
  }
}

</mosaic_0001>

<bundles_post_ra>
// kernel: tpu_custom_call.1
= control target key start
LH: loop header
LB: loop body
LE: loop exit
PB: predicated region body
PF: predicated region fallthrough
CT: control target
= control target key end

     0   :  { %s2810_s0 = inlined_call_operand.vmem [shape: f32[256,96], index: 0, kind: input, shape index: {}]   ;;  %s2811_s1 = inlined_call_operand.vmem [shape: f32[256,96], index: 1, kind: input, shape index: {}]   ;;  %s2812_s2 = inlined_call_operand.vmem [shape: f32[256,256], index: 2, kind: input, shape index: {}]   ;;  %s2813_s3 = inlined_call_operand.vmem [shape: f32[1,96], index: 3, kind: input, shape index: {}]   ;;  %s2814_s4 = inlined_call_operand.vmem [shape: f32[1,96], index: 4, kind: input, shape index: {}]   ;;  %s2815_s5 = inlined_call_operand.vmem [shape: f32[96,256], index: 5, kind: input, shape index: {}]   ;;  %s2816_s6 = inlined_call_operand.vmem [shape: f32[96,256], index: 6, kind: input, shape index: {}]   ;;  %s2817_s7 = inlined_call_operand.vmem [shape: f32[1,256], index: 7, kind: input, shape index: {}]   ;;  %s2818_s8 = inlined_call_operand.vmem [shape: f32[1,256], index: 8, kind: input, shape index: {}]   ;;  %s2819_s9 = inlined_call_operand.hbm [shape: f32[256,256], index: 9, kind: output, shape index: {}]  }
   0x1   :  { %2823 = sst [smem:[#allocation11_spill]] %s2817_s7 }
   0x2   :  { %2824 = sst [smem:[#allocation12_spill]] %s2819_s9 }
   0x3   :  { %14 = vsyncpa [#allocation6], 0 }
   0x4   :  { %16 = vsyncpa [#allocation6 + $0x1], 0  ;;  %s2154_s30 = smov 0   ;;  %s2156_s10 = smov 0  }
   0x5   :  { %s2158_s11 = smov 0   ;;  %s2160_s12 = smov 0  }
   0x6   :  { %s2162_s13 = smov 0   ;;  %s2164_s14 = smov 0  }
   0x7   :  { %s2166_s15 = smov 0   ;;  %s2168_s16 = smov 0  }
   0x8   :  { %s2170_s17 = smov 0   ;;  %s2172_s18 = smov 0  }
   0x9 LB: > { %s1602_s19 = sadd.s32 4294967295, %s2098_s18   ;;  %s1603_s20 = sadd.s32 4294967294, %s2098_s18   ;;  %s2098_s18 = sphi %s2172_s18, %s22_s18   ;;  %s2094_s17 = sphi %s2170_s17, %s2845_s17   ;;  %s2090_s16 = sphi %s2168_s16, %s2844_s16   ;;  %s2086_s15 = sphi %s2166_s15, %s2843_s15   ;;  %s2082_s14 = sphi %s2164_s14, %s2842_s14   ;;  %s2078_s13 = sphi %s2162_s13, %s2841_s13   ;;  %s2074_s12 = sphi %s2160_s12, %s2840_s12   ;;  %s2070_s11 = sphi %s2158_s11, %s2839_s11   ;;  %s2066_s10 = sphi %s2156_s10, %s2838_s10   ;;  %s2062_s30 = sphi %s2154_s30, %s2837_s30  }
   0xa   : > { %s31_s21 = sadd.s32 1, %s2090_s16  ;;  %s34_s22 = sadd.s32 1, %s2094_s17 }
   0xb   : > { %p32_p0 = scmp.ge.s32.totalorder %s31_s21, 2  ;;  %s95_s23 = sadd.s32 1, %s2078_s13 }
   0xc   : > { %p102_p1 = scmp.ne.s32.totalorder %s2078_s13, %s2074_s12  ;;  %p103_p2 = scmp.eq.s32.totalorder %s2098_s18, 0 }
   0xd   : > { %s2847_s21 = smov (%p32_p0, %s31_s21), 0  ;;  %s2849_s22 = smov (!%p32_p0, %s34_s22), %s2094_s17 }
   0xe   : > { %2825 = sst [smem:[#allocation8_spill]] %s2847_s21  ;;  %s91_s24 = ssub.s32 %s2090_s16, %s2847_s21 }
   0xf   : > { %p2220_p3 = por %p103_p2, %p102_p1  ;;  %p36_p4 = scmp.ge.s32.totalorder %s2849_s22, 2 }
  0x10   : > { %p161_p5 = scmp.eq.s32.totalorder %s91_s24, 0  ;;  %s163_s26 = sadd.s32 1, %s2070_s11 }
  0x11   : > { %p170_p6 = scmp.ne.s32.totalorder %s2070_s11, %s2066_s10  ;;  %s2851_s22 = smov (%p36_p4, %s2849_s22), 0 }
  0x12   : > { %2827 = sst [smem:[#allocation9_spill]] %s2851_s22  ;;  %s90_s28 = ssub.s32 %s2094_s17, %s2851_s22 }
  0x13   : > { %s2230_s27 = scalar_select %p161_p5, %s2070_s11, %s163_s26  }
  0x14   : > { %p2234_p7 = por %p170_p6, %p103_p2  ;;  %s92_s21 = sor.u32 %s91_s24, %s90_s28 }
  0x15   : > { %p280_p8 = scmp.eq.s32.totalorder %s1602_s19, 3  ;;  %p93_p9 = scmp.eq.s32.totalorder %s92_s21, 0 }
  0x16   : > { %p285_p10 = scmp.ne.s32.totalorder %s2074_s12, %s2062_s30  ;;  %p286_p12 = scmp.eq.s32.totalorder %s1603_s20, 3 }
  0x17   : > { %p2243_p11 = por %p280_p8, %p102_p1  ;;  %p1605_p0 = scmp.ge.s32.totalorder %s2098_s18, 4 }
  0x18   : > { %s2248_s7 = scalar_select %p93_p9, %s2078_s13, %s95_s23  }
  0x19   : > { %p2250_p13 = por %p286_p12, %p285_p10  ;;  %308 = sbr.rel (%p1605_p0) target bundleno = 66 (0x42), region = 24 }
  0x1a   : > { %2830 = sst [smem:[#allocation10_spill]] %s2248_s7 }
  0x20   : > { %329 = sbr.rel (!%p2220_p3) target bundleno = 46 (0x2e), region = 36  ;;  %s331_s19 = sand.u32 (%p2220_p3), 1, %s2078_s13  }
  0x21   : > { %s1661_s21 = sshll.u32 (%p2220_p3), %s2094_s17, 5  ;;  %s1606_s24 = sshll.u32 (%p2220_p3), %s331_s19, 7 }
  0x22   : > { %s336_s28 = sadd.s32 (%p2220_p3), %s2090_s16, %s1661_s21  ;;  %s333_s25 = scalar_lea.vmem (%p2220_p3), [#allocation2], %s1606_s24 }
  0x23   : > { %s1609_s20 = sshll.u32 (%p2220_p3), %s336_s28, 3 }
  0x24   : > { %s2263_s7 = scalar_lea.vmem (%p2220_p3), %s2812_s2, %s1609_s20 }
  0x25   : > { %v396_v0 = vld [vmem:[%s2263_s7] sm:$0xff] (%p2220_p3)  ;;  %v398_v1 = vld [vmem:[%s2263_s7 + $0x10] sm:$0xff] (%p2220_p3) }
  0x26   : > { %v400_v2 = vld [vmem:[%s2263_s7 + $0x20] sm:$0xff] (%p2220_p3)  ;;  %397 = vst [vmem:[%s333_s25] sm:$0xff] (%p2220_p3), %v396_v0  ;;  %399 = vst [vmem:[%s333_s25 + $0x8] sm:$0xff] (%p2220_p3), %v398_v1  ;;  %v402_v3 = vld [vmem:[%s2263_s7 + $0x30] sm:$0xff] (%p2220_p3) }
  0x27   : > { %401 = vst [vmem:[%s333_s25 + $0x10] sm:$0xff] %v400_v2  ;;  %v404_v4 = vld [vmem:[%s2263_s7 + $0x40] sm:$0xff]  ;;  %v406_v5 = vld [vmem:[%s2263_s7 + $0x50] sm:$0xff]  ;;  %403 = vst [vmem:[%s333_s25 + $0x18] sm:$0xff] %v402_v3 }
  0x28   : > { %405 = vst [vmem:[%s333_s25 + $0x20] sm:$0xff] %v404_v4  ;;  %407 = vst [vmem:[%s333_s25 + $0x28] sm:$0xff] %v406_v5  ;;  %v408_v6 = vld [vmem:[%s2263_s7 + $0x60] sm:$0xff]  ;;  %v410_v7 = vld [vmem:[%s2263_s7 + $0x70] sm:$0xff] }
  0x29   : > { %v412_v8 = vld [vmem:[%s2263_s7 + $0x80] sm:$0xff]  ;;  %409 = vst [vmem:[%s333_s25 + $0x30] sm:$0xff] %v408_v6  ;;  %411 = vst [vmem:[%s333_s25 + $0x38] sm:$0xff] %v410_v7  ;;  %v414_v9 = vld [vmem:[%s2263_s7 + $0x90] sm:$0xff] }
  0x2a   : > { %413 = vst [vmem:[%s333_s25 + $0x40] sm:$0xff] %v412_v8  ;;  %v416_v10 = vld [vmem:[%s2263_s7 + $0xa0] sm:$0xff]  ;;  %v418_v11 = vld [vmem:[%s2263_s7 + $0xb0] sm:$0xff]  ;;  %415 = vst [vmem:[%s333_s25 + $0x48] sm:$0xff] %v414_v9 }
  0x2b   : > { %417 = vst [vmem:[%s333_s25 + $0x50] sm:$0xff] %v416_v10  ;;  %419 = vst [vmem:[%s333_s25 + $0x58] sm:$0xff] %v418_v11  ;;  %v420_v12 = vld [vmem:[%s2263_s7 + $0xc0] sm:$0xff]  ;;  %v422_v13 = vld [vmem:[%s2263_s7 + $0xd0] sm:$0xff] }
  0x2c   : > { %v424_v14 = vld [vmem:[%s2263_s7 + $0xe0] sm:$0xff]  ;;  %421 = vst [vmem:[%s333_s25 + $0x60] sm:$0xff] %v420_v12  ;;  %423 = vst [vmem:[%s333_s25 + $0x68] sm:$0xff] %v422_v13  ;;  %v426_v15 = vld [vmem:[%s2263_s7 + $0xf0] sm:$0xff] }
  0x2d   : > { %425 = vst [vmem:[%s333_s25 + $0x70] sm:$0xff] %v424_v14  ;;  %427 = vst [vmem:[%s333_s25 + $0x78] sm:$0xff] %v426_v15 }
  0x2e PF: > { %433 = sbr.rel (!%p2234_p7) target bundleno = 56 (0x38), region = 74  ;;  %s435_s22 = sand.u32 (%p2234_p7), 1, %s2070_s11  }
  0x2f   : > { %s1610_s19 = sshll.u32 (%p2234_p7), %s2090_s16, 3  ;;  %s1863_s21 = smul.u32 (%p2234_p7), 96, %s435_s22 }
  0x30   : > { %s439_s20 = scalar_lea.vmem (%p2234_p7), %s2815_s5, %s1610_s19 }
  0x31   : > { %v489_v16 = vld [vmem:[%s439_s20] sm:$0xff] (%p2234_p7)  ;;  %v491_v17 = vld [vmem:[%s439_s20 + $0x10] sm:$0xff] (%p2234_p7)  ;;  %s437_s7 = scalar_lea.vmem (%p2234_p7), [#allocation3], %s1863_s21 }
  0x32   : > { %v493_v18 = vld [vmem:[%s439_s20 + $0x20] sm:$0xff] (%p2234_p7)  ;;  %v495_v19 = vld [vmem:[%s439_s20 + $0x30] sm:$0xff] (%p2234_p7)  ;;  %490 = vst [vmem:[%s437_s7] sm:$0xff] (%p2234_p7), %v489_v16  ;;  %492 = vst [vmem:[%s437_s7 + $0x8] sm:$0xff] (%p2234_p7), %v491_v17 }
  0x33   : > { %v497_v20 = vld [vmem:[%s439_s20 + $0x40] sm:$0xff] (%p2234_p7)  ;;  %v499_v21 = vld [vmem:[%s439_s20 + $0x50] sm:$0xff] (%p2234_p7)  ;;  %494 = vst [vmem:[%s437_s7 + $0x10] sm:$0xff] (%p2234_p7), %v493_v18  ;;  %496 = vst [vmem:[%s437_s7 + $0x18] sm:$0xff] (%p2234_p7), %v495_v19 }
  0x34   : > { %498 = vst [vmem:[%s437_s7 + $0x20] sm:$0xff] (%p2234_p7), %v497_v20  ;;  %500 = vst [vmem:[%s437_s7 + $0x28] sm:$0xff] (%p2234_p7), %v499_v21  ;;  %v501_v22 = vld [vmem:[%s439_s20 + $0x60] sm:$0xff] (%p2234_p7)  ;;  %v503_v23 = vld [vmem:[%s439_s20 + $0x70] sm:$0xff] (%p2234_p7) }
  0x35   : > { %v505_v24 = vld [vmem:[%s439_s20 + $0x80] sm:$0xff]  ;;  %502 = vst [vmem:[%s437_s7 + $0x30] sm:$0xff] %v501_v22  ;;  %504 = vst [vmem:[%s437_s7 + $0x38] sm:$0xff] %v503_v23  ;;  %v507_v25 = vld [vmem:[%s439_s20 + $0x90] sm:$0xff] }
  0x36   : > { %506 = vst [vmem:[%s437_s7 + $0x40] sm:$0xff] %v505_v24  ;;  %v509_v26 = vld [vmem:[%s439_s20 + $0xa0] sm:$0xff]  ;;  %v511_v27 = vld [vmem:[%s439_s20 + $0xb0] sm:$0xff]  ;;  %508 = vst [vmem:[%s437_s7 + $0x48] sm:$0xff] %v507_v25 }
  0x37   : > { %510 = vst [vmem:[%s437_s7 + $0x50] sm:$0xff] %v509_v26  ;;  %512 = vst [vmem:[%s437_s7 + $0x58] sm:$0xff] %v511_v27 }
  0x38 PF: > { %518 = sbr.rel (!%p2234_p7) target bundleno = 66 (0x42), region = 112  ;;  %s520_s23 = sand.u32 (%p2234_p7), 1, %s2070_s11  }
  0x39   : > { %s1611_s25 = sshll.u32 (%p2234_p7), %s2090_s16, 3  ;;  %s1864_s22 = smul.u32 (%p2234_p7), 96, %s520_s23 }
  0x3a   : > { %s524_s24 = scalar_lea.vmem (%p2234_p7), %s2816_s6, %s1611_s25 }
  0x3b   : > { %v574_v28 = vld [vmem:[%s524_s24] sm:$0xff] (%p2234_p7)  ;;  %v576_v29 = vld [vmem:[%s524_s24 + $0x10] sm:$0xff] (%p2234_p7)  ;;  %s522_s28 = scalar_lea.vmem (%p2234_p7), [#allocation4], %s1864_s22 }
  0x3c   : > { %v578_v30 = vld [vmem:[%s524_s24 + $0x20] sm:$0xff] (%p2234_p7)  ;;  %v580_v31 = vld [vmem:[%s524_s24 + $0x30] sm:$0xff] (%p2234_p7)  ;;  %575 = vst [vmem:[%s522_s28] sm:$0xff] (%p2234_p7), %v574_v28  ;;  %577 = vst [vmem:[%s522_s28 + $0x8] sm:$0xff] (%p2234_p7), %v576_v29 }
  0x3d   : > { %v582_v32 = vld [vmem:[%s524_s24 + $0x40] sm:$0xff] (%p2234_p7)  ;;  %v584_v33 = vld [vmem:[%s524_s24 + $0x50] sm:$0xff] (%p2234_p7)  ;;  %579 = vst [vmem:[%s522_s28 + $0x10] sm:$0xff] (%p2234_p7), %v578_v30  ;;  %581 = vst [vmem:[%s522_s28 + $0x18] sm:$0xff] (%p2234_p7), %v580_v31 }
  0x3e   : > { %583 = vst [vmem:[%s522_s28 + $0x20] sm:$0xff] (%p2234_p7), %v582_v32  ;;  %585 = vst [vmem:[%s522_s28 + $0x28] sm:$0xff] (%p2234_p7), %v584_v33  ;;  %v586_v34 = vld [vmem:[%s524_s24 + $0x60] sm:$0xff] (%p2234_p7)  ;;  %v588_v35 = vld [vmem:[%s524_s24 + $0x70] sm:$0xff] (%p2234_p7) }
  0x3f   : > { %v590_v36 = vld [vmem:[%s524_s24 + $0x80] sm:$0xff]  ;;  %587 = vst [vmem:[%s522_s28 + $0x30] sm:$0xff] %v586_v34  ;;  %589 = vst [vmem:[%s522_s28 + $0x38] sm:$0xff] %v588_v35  ;;  %v592_v37 = vld [vmem:[%s524_s24 + $0x90] sm:$0xff] }
  0x40   : > { %591 = vst [vmem:[%s522_s28 + $0x40] sm:$0xff] %v590_v36  ;;  %v594_v38 = vld [vmem:[%s524_s24 + $0xa0] sm:$0xff]  ;;  %v596_v39 = vld [vmem:[%s524_s24 + $0xb0] sm:$0xff]  ;;  %593 = vst [vmem:[%s522_s28 + $0x48] sm:$0xff] %v592_v37 }
  0x41   : > { %595 = vst [vmem:[%s522_s28 + $0x50] sm:$0xff] %v594_v38  ;;  %597 = vst [vmem:[%s522_s28 + $0x58] sm:$0xff] %v596_v39 }
  0x42 PF: > { %p1612_p1 = scmp.ge.s32.totalorder %s2098_s18, 1  ;;  %p614_p2 = scmp.lt.s32.totalorder %s2098_s18, 5 }
  0x44   : > { %p615_p3 = pnand %p1612_p1, %p614_p2 }
  0x45   : > { %s628_s29 = sand.u32 (!%p615_p3), 1, %s2066_s10   ;;  %s1615_s20 = sshll.u32 (!%p615_p3), %s2086_s15, 4  ;;  %v2319_v50 = vld [vmem:[%s2814_s4] ss:$0 sm:$0xff] (!%p615_p3)  ;;  %vm827_vm0 = vcmask (!%p615_p3), 785408  }
  0x46   : > { %618 = sbr.rel (%p615_p3) target bundleno = 382 (0x17e), region = 158  ;;  %p695_p4 = scmp.lt.s32.totalorder (!%p615_p3), %s1615_s20, 31  ;;  %v2332_v57 = vld [vmem:[%s2813_s3] ss:$0 sm:$0xff] (!%p615_p3) }
  0x47   : > { %s1865_s7 = smul.u32 (!%p615_p3), 96, %s628_s29  ;;  %p707_p5 = scmp.lt.s32.totalorder (!%p615_p3), %s2082_s14, 1 }
  0x48   : > { %s2832_s29 = sld [smem:[#allocation11_spill]] (!%p615_p3)  ;;  %s2833_s28 = sld [smem:[#allocation12_spill]] (!%p615_p3) }
  0x49   : > { %s2299_s23 = scalar_lea.vmem (!%p615_p3), [#allocation4], %s1865_s7  ;;  %s2307_s10 = scalar_lea.vmem (!%p615_p3), [#allocation3], %s1865_s7 }
  0x4a   : > { %v1037_v40 = vld [vmem:[%s2299_s23] sm:$0xff] (!%p615_p3)  ;;  %v1038_v41 = vld [vmem:[%s2299_s23 + $0x8] sm:$0xff] (!%p615_p3)  ;;  %v1039_v42 = vld [vmem:[%s2299_s23 + $0x10] sm:$0xff] (!%p615_p3) }
  0x4b   : > { %v1839_v43 = vpack.c.bf16 (!%p615_p3), %v1038_v41, %v1037_v40  ;;  %v1040_v44 = vld [vmem:[%s2299_s23 + $0x18] sm:$0xff] (!%p615_p3)  ;;  %v1041_v46 = vld [vmem:[%s2299_s23 + $0x20] sm:$0xff] (!%p615_p3)  ;;  %v1042_v47 = vld [vmem:[%s2299_s23 + $0x28] sm:$0xff] (!%p615_p3) }
  0x4c   : > { %v1843_v45 = vpack.c.bf16 (!%p615_p3), %v1040_v44, %v1039_v42  ;;  %v808_v48 = vld [vmem:[%s2307_s10] sm:$0xff] (!%p615_p3)  ;;  %v809_v49 = vld [vmem:[%s2307_s10 + $0x8] sm:$0xff] (!%p615_p3)  ;;  %v810_v52 = vld [vmem:[%s2307_s10 + $0x10] sm:$0xff] (!%p615_p3)  ;;  %v1847_v54 = vpack.c.bf16 (!%p615_p3), %v1042_v47, %v1041_v46 }
  0x4d   : > { %s2853_s20 = smov (!%p695_p4, %s1615_s20), 31  ;;  %1840 = vmatprep.subr.bf16.mxu1 %v1839_v43  ;;  %v1815_v51 = vpack.c.bf16 %v809_v49, %v808_v48  ;;  %v811_v53 = vld [vmem:[%s2307_s10 + $0x18] sm:$0xff]  ;;  %v1043_v55 = vld [vmem:[%s2299_s23 + $0x30] sm:$0xff]  ;;  %v812_v61 = vld [vmem:[%s2307_s10 + $0x20] sm:$0xff] }
  0x4e   : > { %s1616_s25 = sshll.u32 %s2853_s20, 3  ;;  %1842 = vmatpush3.bf16.msra.mxu1 %v1839_v43  ;;  %v1819_v56 = vpack.c.bf16 %v811_v53, %v810_v52  ;;  %v1044_v59 = vld [vmem:[%s2299_s23 + $0x38] sm:$0xff]  ;;  %v813_v62 = vld [vmem:[%s2307_s10 + $0x28] sm:$0xff]  ;;  %v814_v5 = vld [vmem:[%s2307_s10 + $0x30] sm:$0xff] }
  0x4f   : > { %s2314_s21 = scalar_lea.vmem %s2811_s1, %s1616_s25  ;;  %s2326_s7 = scalar_lea.vmem %s2810_s0, %s1616_s25  ;;  %1844 = vmatprep.subr.bf16.mxu1 %v1843_v45  ;;  %1816 = vmatprep.subr.bf16.mxu0 %v1815_v51  ;;  %v1823_v1 = vpack.c.bf16 %v813_v62, %v812_v61  ;;  %v1851_v4 = vpack.c.bf16 %v1044_v59, %v1043_v55  ;;  %v815_v6 = vld [vmem:[%s2307_s10 + $0x38] sm:$0xff]  ;;  %v1045_v7 = vld [vmem:[%s2299_s23 + $0x40] sm:$0xff]  ;;  %v1046_v8 = vld [vmem:[%s2299_s23 + $0x48] sm:$0xff] }
  0x50   : > { %v715_v58 = vld [vmem:[%s2314_s21] sm:$0xff]  ;;  %1818 = vmatpush3.bf16.msra.mxu0 %v1815_v51  ;;  %v716_v2 = vld [vmem:[%s2314_s21 + $0x8] sm:$0xff]  ;;  %v717_v3 = vld [vmem:[%s2314_s21 + $0x10] sm:$0xff]  ;;  %v1827_v13 = vpack.c.bf16 %v815_v6, %v814_v5  ;;  %v1855_v15 = vpack.c.bf16 %v1046_v8, %v1045_v7 }
  0x51   : > { %v738_v60 = vmul.f32 %v2319_v50, %v715_v58  ;;  %v776_v63 = vld [vmem:[%s2326_s7] sm:$0xff]  ;;  %1820 = vmatprep.subr.bf16.mxu0 %v1819_v56  ;;  %v739_v10 = vmul.f32 %v2319_v50, %v716_v2  ;;  %v740_v11 = vmul.f32 %v2319_v50, %v717_v3  ;;  %v718_v14 = vld [vmem:[%s2314_s21 + $0x18] sm:$0xff]  ;;  %v817_v18 = vld [vmem:[%s2307_s10 + $0x48] sm:$0xff] }
  0x52   : > { %1846 = vmatpush3.bf16.msra.mxu1 %v1843_v45  ;;  %v719_v16 = vld [vmem:[%s2314_s21 + $0x20] sm:$0xff]  ;;  %v1047_v19 = vld [vmem:[%s2299_s23 + $0x50] sm:$0xff]  ;;  %v1048_v20 = vld [vmem:[%s2299_s23 + $0x58] sm:$0xff]  ;;  %v741_v23 = vmul.f32 %v2319_v50, %v718_v14  ;;  %s708_s23 = scalar_select %p707_p5, %s2082_s14, 1 }
  0x53   : > { %v760_v0 = vadd.f32 %v2332_v57, %v738_v60  ;;  %1848 = vmatprep.subr.bf16.mxu1 %v1847_v54  ;;  %v816_v17 = vld [vmem:[%s2307_s10 + $0x40] sm:$0xff]  ;;  %v761_v21 = vadd.f32 %v2332_v57, %v739_v10  ;;  %v762_v22 = vadd.f32 %v2332_v57, %v740_v11  ;;  %v720_v24 = vld [vmem:[%s2314_s21 + $0x28] sm:$0xff]  ;;  %v778_v26 = vld [vmem:[%s2326_s7 + $0x10] sm:$0xff]  ;;  %v742_v27 = vmul.f32 %v2319_v50, %v719_v16 }
  0x54   : > { %1822 = vmatpush3.bf16.msra.mxu0 %v1819_v56  ;;  %v777_v25 = vld [vmem:[%s2326_s7 + $0x8] sm:$0xff]  ;;  %v1831_v28 = vpack.c.bf16 %v817_v18, %v816_v17  ;;  %v1859_v29 = vpack.c.bf16 %v1048_v20, %v1047_v19  ;;  %v721_v30 = vld [vmem:[%s2314_s21 + $0x30] sm:$0xff]  ;;  %v819_v32 = vld [vmem:[%s2307_s10 + $0x58] sm:$0xff]  ;;  %v743_v33 = vmul.f32 %v2319_v50, %v720_v24  ;;  %v763_v36 = vadd.f32 %v2332_v57, %v741_v23  ;;  %s709_s20 = scalar_lea.vmem %s2832_s29, %s708_s23 }
  0x55   : > { %v792_v9 = vmul.f32 %v776_v63, %v760_v0  ;;  %1824 = vmatprep.subr.bf16.mxu0 %v1823_v1  ;;  %v818_v31 = vld [vmem:[%s2307_s10 + $0x50] sm:$0xff]  ;;  %v793_v34 = vmul.f32 %v777_v25, %v761_v21  ;;  %v794_v35 = vmul.f32 %v778_v26, %v762_v22  ;;  %v779_v37 = vld [vmem:[%s2326_s7 + $0x18] sm:$0xff]  ;;  %v764_v38 = vadd.f32 %v2332_v57, %v742_v27  ;;  %v780_v42 = vld [vmem:[%s2326_s7 + $0x20] sm:$0xff]  ;;  %s1662_s10 = sshll.u32 %s2086_s15, 5 }
  0x56   : > { %1850 = vmatpush3.bf16.msra.mxu1 %v1847_v54  ;;  %v744_v39 = vmul.f32 %v2319_v50, %v721_v30  ;;  %v1835_v40 = vpack.c.bf16 %v819_v32, %v818_v31  ;;  %v722_v41 = vld [vmem:[%s2314_s21 + $0x38] sm:$0xff]  ;;  %v723_v43 = vld [vmem:[%s2314_s21 + $0x40] sm:$0xff]  ;;  %v765_v44 = vadd.f32 %v2332_v57, %v743_v33  ;;  %v795_v47 = vmul.f32 %v779_v37, %v763_v36  ;;  %v781_v48 = vld [vmem:[%s2326_s7 + $0x28] sm:$0xff]  ;;  %s1438_s15 = sadd.s32 %s2082_s14, %s1662_s10 }
  0x57   : > { %v1021_v12 = vmul.f32 %v792_v9, %v792_v9  ;;  %1852 = vmatprep.subr.bf16.mxu1 %v1851_v4  ;;  %1743 = vmatprep.mubr.msk.f32.mxu0 %vm827_vm0, %v792_v9  ;;  %v1022_v45 = vmul.f32 %v793_v34, %v793_v34  ;;  %v1023_v46 = vmul.f32 %v794_v35, %v794_v35  ;;  %v724_v54 = vld [vmem:[%s2314_s21 + $0x48] sm:$0xff]  ;;  %v782_v55 = vld [vmem:[%s2326_s7 + $0x30] sm:$0xff]  ;;  %v783_v0 = vld [vmem:[%s2326_s7 + $0x38] sm:$0xff]  ;;  %s1658_s25 = sshll.u32 %s1438_s15, 7 }
  0x58   : > { %1826 = vmatpush3.bf16.msra.mxu0 %v1823_v1  ;;  %v745_v49 = vmul.f32 %v2319_v50, %v722_v41  ;;  %v796_v51 = vmul.f32 %v780_v42, %v764_v38  ;;  %v766_v52 = vadd.f32 %v2332_v57, %v744_v39  ;;  %v746_v53 = vmul.f32 %v2319_v50, %v723_v43  ;;  %v725_v56 = vld [vmem:[%s2314_s21 + $0x50] sm:$0xff]  ;;  %v726_v3 = vld [vmem:[%s2314_s21 + $0x58] sm:$0xff]  ;;  %v727_v5 = vld [vmem:[%s2314_s21 + $0x60] sm:$0xff]  ;;  %s2746_s29 = scalar_lea.hbm %s2833_s28, %s1658_s25 }
  0x59   : > { %1791 = vmatprep.mubr.msk.f32.mxu1 %vm827_vm0, %v1021_v12  ;;  %1828 = vmatprep.subr.bf16.mxu0 %v1827_v13  ;;  %v797_v58 = vmul.f32 %v781_v48, %v765_v44  ;;  %v1024_v59 = vmul.f32 %v795_v47, %v795_v47  ;;  %v747_v61 = vmul.f32 %v2319_v50, %v724_v54  ;;  %v728_v10 = vld [vmem:[%s2314_s21 + $0x68] sm:$0xff]  ;;  %v786_v16 = vld [vmem:[%s2326_s7 + $0x50] sm:$0xff]  ;;  %v787_v24 = vld [vmem:[%s2326_s7 + $0x58] sm:$0xff] }
  0x5a   : > { %1854 = vmatpush3.bf16.msra.mxu1 %v1851_v4  ;;  %v767_v60 = vadd.f32 %v2332_v57, %v745_v49  ;;  %v1025_v62 = vmul.f32 %v796_v51, %v796_v51  ;;  %v798_v63 = vmul.f32 %v782_v55, %v766_v52  ;;  %v768_v1 = vadd.f32 %v2332_v57, %v746_v53  ;;  %v784_v4 = vld [vmem:[%s2326_s7 + $0x40] sm:$0xff]  ;;  %v729_v17 = vld [vmem:[%s2314_s21 + $0x70] sm:$0xff]  ;;  %v730_v27 = vld [vmem:[%s2314_s21 + $0x78] sm:$0xff]  ;;  %s712_s21 = scalar_lea.vmem %s2818_s8, %s708_s23 }
  0x5b   : > { %1856 = vmatprep.subr.bf16.mxu1 %v1855_v15  ;;  %v748_v2 = vmul.f32 %v2319_v50, %v725_v56  ;;  %v1026_v6 = vmul.f32 %v797_v58, %v797_v58  ;;  %v769_v8 = vadd.f32 %v2332_v57, %v747_v61  ;;  %v749_v9 = vmul.f32 %v2319_v50, %v726_v3  ;;  %v790_v37 = vld [vmem:[%s2326_s7 + $0x70] sm:$0xff]  ;;  %v791_v42 = vld [vmem:[%s2326_s7 + $0x78] sm:$0xff] }
  0x5c   : > { %1830 = vmatpush3.bf16.msra.mxu0 %v1827_v13  ;;  %v799_v7 = vmul.f32 %v783_v0, %v767_v60  ;;  %v1027_v11 = vmul.f32 %v798_v63, %v798_v63  ;;  %v800_v12 = vmul.f32 %v784_v4, %v768_v1  ;;  %v785_v13 = vld [vmem:[%s2326_s7 + $0x48] sm:$0xff]  ;;  %v751_v18 = vmul.f32 %v2319_v50, %v728_v10 }
  0x5d   : > { %1832 = vmatprep.subr.bf16.mxu0 %v1831_v28  ;;  %v770_v14 = vadd.f32 %v2332_v57, %v748_v2  ;;  %v801_v20 = vmul.f32 %v785_v13, %v769_v8  ;;  %v771_v21 = vadd.f32 %v2332_v57, %v749_v9  ;;  %v752_v26 = vmul.f32 %v2319_v50, %v729_v17 }
  0x5e   : > { %1858 = vmatpush3.bf16.msra.mxu1 %v1855_v15  ;;  %v750_v15 = vmul.f32 %v2319_v50, %v727_v5  ;;  %v1028_v19 = vmul.f32 %v799_v7, %v799_v7  ;;  %v1029_v22 = vmul.f32 %v800_v12, %v800_v12  ;;  %v753_v32 = vmul.f32 %v2319_v50, %v730_v27 }
  0x5f   : > { %1860 = vmatprep.subr.bf16.mxu1 %v1859_v29  ;;  %v802_v23 = vmul.f32 %v786_v16, %v770_v14  ;;  %v1030_v30 = vmul.f32 %v801_v20, %v801_v20  ;;  %v803_v31 = vmul.f32 %v787_v24, %v771_v21  ;;  %v774_v36 = vadd.f32 %v2332_v57, %v752_v26 }
  0x60   : > { %1834 = vmatpush3.bf16.msra.mxu0 %v1831_v28  ;;  %v772_v25 = vadd.f32 %v2332_v57, %v750_v15  ;;  %v788_v28 = vld [vmem:[%s2326_s7 + $0x60] sm:$0xff] }
  0x61   : > { %1836 = vmatprep.subr.bf16.mxu0 %v1835_v40  ;;  %v1031_v33 = vmul.f32 %v802_v23, %v802_v23  ;;  %v1032_v38 = vmul.f32 %v803_v31, %v803_v31  ;;  %v806_v41 = vmul.f32 %v790_v37, %v774_v36 }
  0x62   : > { %1862 = vmatpush3.bf16.msra.mxu1 %v1859_v29  ;;  %v773_v29 = vadd.f32 %v2332_v57, %v751_v18 }
  0x64   : > { %1838 = vmatpush3.bf16.msra.mxu0 %v1835_v40  ;;  %v775_v40 = vadd.f32 %v2332_v57, %v753_v32  ;;  %v1035_v57 = vmul.f32 %v806_v41, %v806_v41 }
  0x65   : > { %1792 = vmatmul.mubr.msk.f32.vlgmr.msra.gmra.mrb[0].mxu1 %vm827_vm0, %v1022_v45 }
  0x66   : > { %1794 = vmatprep.mubr.msk.f32.mxu1 %vm827_vm0, %v1023_v46  ;;  %v807_v44 = vmul.f32 %v791_v42, %v775_v40  ;;  %v2448_v46 = vld [vmem:[%s712_s21] ss:$0 sm:$0xff] }
  0x67   : > { %1744 = vmatmul.mubr.msk.f32.vlgmr.msra.gmra.mrb[0].mxu0 %vm827_vm0, %v793_v34  ;;  %v804_v34 = vmul.f32 %v788_v28, %v772_v25 }
  0x68   : > { %1746 = vmatprep.mubr.msk.f32.mxu0 %vm827_vm0, %v794_v35  ;;  %v789_v35 = vld [vmem:[%s2326_s7 + $0x68] sm:$0xff]  ;;  %v1036_v45 = vmul.f32 %v807_v44, %v807_v44  ;;  %s621_s7 = sand.u32 1, %s2074_s12  }
  0x69   : > { %1795 = vmatmul.mubr.msk.f32.gmra.mrb[2].mxu1 %vm827_vm0, %v1024_v59  ;;  %v805_v39 = vmul.f32 %v789_v35, %v773_v29  ;;  %v1033_v50 = vmul.f32 %v804_v34, %v804_v34  ;;  %v2469_v59 = vld [vmem:[%s709_s20] ss:$0 sm:$0xff]  ;;  %s2477_s22 = sshll.u32 %s621_s7, 7  ;;  %s2752_s20 = scalar_lea.sflag [#allocation6], %s621_s7 }
  0x6a   : > { %1797 = vmatprep.mubr.msk.f32.mxu1 %vm827_vm0, %v1025_v62  ;;  %s2516_s19 = scalar_lea.vmem [#allocation2], %s2477_s22  ;;  %s2580_s23 = scalar_lea.vmem [#allocation5], %s2477_s22 }
  0x6b   : > { %1747 = vmatmul.mubr.msk.f32.gmra.mrb[2].mxu0 %vm827_vm0, %v795_v47  ;;  %v1034_v43 = vmul.f32 %v805_v39, %v805_v39  ;;  %v1249_v27 = vld [vmem:[%s2516_s19] sm:$0xff]  ;;  %v1252_v42 = vld [vmem:[%s2516_s19 + $0x18] sm:$0xff]  ;;  %s1441_s14 = sshll.u32 %s2580_s23, 4  ;;  %s2741_s14 = int_to_ptr.vmem [resolvable:$true] %s1441_s14 }
  0x6c   : > { %1749 = vmatprep.mubr.msk.f32.mxu0 %vm827_vm0, %v796_v51  ;;  %s1988_s22 = scalar_lea.vmem %s2741_s14, 2048 }
  0x6d   : > { %1798 = vmatmul.mubr.msk.f32.gmra.mrb[4].mxu1 %vm827_vm0, %v1026_v6  ;;  %p1989_p6 = scmp.ne.s32.totalorder %s2741_s14, %s1988_s22 }
  0x6e   : > { %1800 = vmatprep.mubr.msk.f32.mxu1 %vm827_vm0, %v1027_v11 }
  0x6f   : > { %1750 = vmatmul.mubr.msk.f32.gmra.mrb[4].mxu0 %vm827_vm0, %v797_v58  ;;  %p1990_p7 = pnand %p1989_p6, %p2243_p11 }
  0x70   : > { %1752 = vmatprep.mubr.msk.f32.mxu0 %vm827_vm0, %v798_v63 }
  0x71   : > { %1801 = vmatmul.mubr.msk.f32.gmra.mrb[6].mxu1 %vm827_vm0, %v1028_v19  ;;  %p1991_p8 = pneg %p1990_p7 }
  0x72   : > { %1803 = vmatprep.mubr.msk.f32.mxu1 %vm827_vm0, %v1029_v22 }
  0x73   : > { %1753 = vmatmul.mubr.msk.f32.gmra.mrb[6].mxu0 %vm827_vm0, %v799_v7 }
  0x74   : > { %1755 = vmatprep.mubr.msk.f32.mxu0 %vm827_vm0, %v800_v12 }
  0x75   : > { %1804 = vmatmul.mubr.msk.f32.gmra.mrb[8].mxu1 %vm827_vm0, %v1030_v30 }
  0x76   : > { %1806 = vmatprep.mubr.msk.f32.mxu1 %vm827_vm0, %v1031_v33 }
  0x77   : > { %1756 = vmatmul.mubr.msk.f32.gmra.mrb[8].mxu0 %vm827_vm0, %v801_v20  ;;  %v1250_v20 = vld [vmem:[%s2516_s19 + $0x8] sm:$0xff] }
  0x78   : > { %1758 = vmatprep.mubr.msk.f32.mxu0 %vm827_vm0, %v802_v23 }
  0x79   : > { %1807 = vmatmul.mubr.msk.f32.gmra.mrb[10].mxu1 %vm827_vm0, %v1032_v38 }
  0x7a   : > { %1809 = vmatprep.mubr.msk.f32.mxu1 %vm827_vm0, %v1033_v50 }
  0x7b   : > { %1759 = vmatmul.mubr.msk.f32.gmra.mrb[10].mxu0 %vm827_vm0, %v803_v31 }
  0x7c   : > { %1761 = vmatprep.mubr.msk.f32.mxu0 %vm827_vm0, %v804_v34 }
  0x7d   : > { %1810 = vmatmul.mubr.msk.f32.gmra.mrb[12].mxu1 %vm827_vm0, %v1034_v43 }
  0x7e   : > { %1812 = vmatprep.mubr.msk.f32.mxu1 %vm827_vm0, %v1035_v57 }
  0x7f   : > { %1762 = vmatmul.mubr.msk.f32.gmra.mrb[12].mxu0 %vm827_vm0, %v805_v39 }
  0x80   : > { %1764 = vmatprep.mubr.msk.f32.mxu0 %vm827_vm0, %v806_v41 }
  0x81   : > { %1813 = vmatmul.mubr.msk.f32.gmra.mrb[14].mxu1 %vm827_vm0, %v1036_v45 }
  0x83   : > { %1765 = vmatmul.mubr.msk.f32.gmra.mrb[14].mxu0 %vm827_vm0, %v807_v44 }
 0x138   : > { %v1793_v47 = vpop.f32.mrb[0].mxu1 }
 0x139   : > { %v2451_v48 = vadd.f32 %v1793_v47, %v2448_v46  ;;  %v1170_v49 = vpop.f32.mrb[1].mxu1 }
 0x13a   : > { %v2454_v51 = vadd.f32 %v2448_v46, %v1170_v49  ;;  %v1745_v52 = vpop.f32.mrb[0].mxu0  ;;  %v1251_v49 = vld [vmem:[%s2516_s19 + $0x10] sm:$0xff] }
 0x13b   : > { %1956 = vrsqrt.f32 %v2451_v48  ;;  %v942_v54 = vpop.f32.mrb[1].mxu0  ;;  %vm1274_vm1 = vcmp.eq.f32.partialorder %v2451_v48, inf  ;;  %vm1276_vm2 = vcmp.eq.f32.partialorder %v2451_v48, 0.0  ;;  %v1277_v1 = vand.u32 2147483648, %v2451_v48 }
 0x13c   : > { %1958 = vrsqrt.f32 %v2454_v51  ;;  %v1796_v53 = vpop.f32.mrb[2].mxu1  ;;  %v948_v3 = vadd.f32 %v1745_v52, %v2469_v59  ;;  %vm1267_vm3 = vcmp.eq.f32.partialorder %v2454_v51, inf  ;;  %vm1269_vm4 = vcmp.eq.f32.partialorder %v2454_v51, 0.0 }
 0x13d   : > { %v2462_v55 = vadd.f32 %v1796_v53, %v2448_v46  ;;  %v1180_v56 = vpop.f32.mrb[3].mxu1  ;;  %v2490_v4 = vadd.f32 %v2469_v59, %v942_v54  ;;  %v1270_v5 = vand.u32 2147483648, %v2454_v51 }
 0x13e   : > { %v2465_v58 = vadd.f32 %v2448_v46, %v1180_v56  ;;  %v1748_v60 = vpop.f32.mrb[2].mxu0 }
 0x13f   : > { %1960 = vrsqrt.f32 %v2462_v55  ;;  %v952_v62 = vpop.f32.mrb[3].mxu0  ;;  %vm1288_vm5 = vcmp.eq.f32.partialorder %v2462_v55, inf  ;;  %v2496_v8 = vadd.f32 %v1748_v60, %v2469_v59  ;;  %vm1290_vm6 = vcmp.eq.f32.partialorder %v2462_v55, 0.0 }
 0x140   : > { %1962 = vrsqrt.f32 %v2465_v58  ;;  %v1799_v61 = vpop.f32.mrb[4].mxu1  ;;  %v1291_v9 = vand.u32 2147483648, %v2462_v55  ;;  %v2504_v14 = vadd.f32 %v2469_v59, %v952_v62  ;;  %vm1281_vm7 = vcmp.eq.f32.partialorder %v2465_v58, inf }
 0x141   : > { %v2473_v63 = vadd.f32 %v1799_v61, %v2448_v46  ;;  %v1190_v0 = vpop.f32.mrb[5].mxu1  ;;  %vm1283_vm8 = vcmp.eq.f32.partialorder %v2465_v58, 0.0  ;;  %v1284_v18 = vand.u32 2147483648, %v2465_v58 }
 0x142   : > { %v2483_v2 = vadd.f32 %v2448_v46, %v1190_v0  ;;  %v1751_v6 = vpop.f32.mrb[4].mxu0 }
 0x143   : > { %1964 = vrsqrt.f32 %v2473_v63  ;;  %v962_v10 = vpop.f32.mrb[5].mxu0  ;;  %v1305_v19 = vand.u32 2147483648, %v2473_v63  ;;  %v2521_v22 = vadd.f32 %v1751_v6, %v2469_v59  ;;  %vm1302_vm9 = vcmp.eq.f32.partialorder %v2473_v63, inf }
 0x144   : > { %1966 = vrsqrt.f32 %v2483_v2  ;;  %v1802_v7 = vpop.f32.mrb[6].mxu1  ;;  %v2525_v23 = vadd.f32 %v2469_v59, %v962_v10  ;;  %vm1304_vm10 = vcmp.eq.f32.partialorder %v2473_v63, 0.0  ;;  %vm1295_vm11 = vcmp.eq.f32.partialorder %v2483_v2, inf }
 0x145   : > { %v1957_v11 = vpop.eup %1956  ;;  %v2501_v12 = vadd.f32 %v1802_v7, %v2448_v46  ;;  %v1200_v13 = vpop.f32.mrb[7].mxu1  ;;  %v1298_v28 = vand.u32 2147483648, %v2483_v2  ;;  %vm1297_vm12 = vcmp.eq.f32.partialorder %v2483_v2, 0.0 }
 0x146   : > { %v1959_v15 = vpop.eup %1958  ;;  %v2509_v16 = vadd.f32 %v2448_v46, %v1200_v13  ;;  %v1273_v17 = vmul.f32 %v1957_v11, %v2451_v48  ;;  %v1754_v24 = vpop.f32.mrb[6].mxu0  ;;  %v1253_v11 = vld [vmem:[%s2516_s19 + $0x20] sm:$0xff] }
 0x147   : > { %1968 = vrsqrt.f32 %v2501_v12  ;;  %v1266_v21 = vmul.f32 %v1959_v15, %v2454_v51  ;;  %v2536_v29 = vadd.f32 %v1754_v24, %v2469_v59  ;;  %v972_v30 = vpop.f32.mrb[7].mxu0  ;;  %v1319_v36 = vand.u32 2147483648, %v2501_v12 }
 0x148   : > { %1970 = vrsqrt.f32 %v2509_v16  ;;  %v1275_v25 = vsel %vm1274_vm1, %v2451_v48, %v1273_v17  ;;  %v1805_v26 = vpop.f32.mrb[8].mxu1  ;;  %vm1316_vm13 = vcmp.eq.f32.partialorder %v2501_v12, inf  ;;  %v2559_v44 = vadd.f32 %v2469_v59, %v972_v30  ;;  %v1256_v30 = vld [vmem:[%s2516_s19 + $0x38] sm:$0xff] }
 0x149   : > { %v1961_v31 = vpop.eup %1960  ;;  %v1278_v32 = vsel %vm1276_vm2, %v1277_v1, %v1275_v25  ;;  %v2541_v33 = vadd.f32 %v1805_v26, %v2448_v46  ;;  %v1268_v34 = vsel %vm1267_vm3, %v2454_v51, %v1266_v21  ;;  %v1210_v35 = vpop.f32.mrb[9].mxu1  ;;  %vm1318_vm14 = vcmp.eq.f32.partialorder %v2501_v12, 0.0 }
 0x14a   : > { %v1963_v37 = vpop.eup %1962  ;;  %v1378_v38 = vmul.f32 %v1278_v32, %v1250_v20  ;;  %v1271_v39 = vsel %vm1269_vm4, %v1270_v5, %v1268_v34  ;;  %v2551_v40 = vadd.f32 %v2448_v46, %v1210_v35  ;;  %v1287_v50 = vmul.f32 %v1961_v31, %v2462_v55  ;;  %v1757_v57 = vpop.f32.mrb[8].mxu0  ;;  %v1254_v5 = vld [vmem:[%s2516_s19 + $0x28] sm:$0xff] }
 0x14b   : > { %1972 = vrsqrt.f32 %v2541_v33  ;;  %v1377_v41 = vmul.f32 %v1271_v39, %v1249_v27  ;;  %v1280_v43 = vmul.f32 %v1963_v37, %v2465_v58  ;;  %vm1309_vm15 = vcmp.eq.f32.partialorder %v2509_v16, inf  ;;  %v2568_v51 = vpop.f32.mrb[9].mxu0  ;;  %v1255_v37 = vld [vmem:[%s2516_s19 + $0x30] sm:$0xff] }
 0x14c   : > { %v1394_v45 = vadd.f32 %v1378_v38, %v948_v3  ;;  %1974 = vrsqrt.f32 %v2551_v40  ;;  %v1289_v47 = vsel %vm1288_vm5, %v2462_v55, %v1287_v50  ;;  %v1808_v48 = vpop.f32.mrb[10].mxu1  ;;  %vm1311_vm0 = vcmp.eq.f32.partialorder %v2509_v16, 0.0 }
 0x14d   : > { %v1965_v52 = vpop.eup %1964  ;;  %v1393_v53 = vadd.f32 %v1377_v41, %v2490_v4  ;;  %v1292_v54 = vsel %vm1290_vm6, %v1291_v9, %v1289_v47  ;;  %v2574_v56 = vadd.f32 %v1808_v48, %v2448_v46  ;;  %v1282_v60 = vsel %vm1281_vm7, %v2465_v58, %v1280_v43  ;;  %v1220_v61 = vpop.f32.mrb[11].mxu1  ;;  %v1258_v48 = vld [vmem:[%s2516_s19 + $0x48] sm:$0xff] }
 0x14e   : > { %v1967_v62 = vpop.eup %1966  ;;  %1410 = vst [vmem:[%s2580_s23 + $0x8] sm:$0xff] %v1394_v45  ;;  %v1380_v0 = vmul.f32 %v1292_v54, %v1252_v42  ;;  %v1285_v55 = vsel %vm1283_vm8, %v1284_v18, %v1282_v60  ;;  %v2586_v1 = vadd.f32 %v2448_v46, %v1220_v61  ;;  %v1301_v3 = vmul.f32 %v1965_v52, %v2473_v63  ;;  %v2594_v7 = vpop.f32.mrb[10].mxu0 }
 0x14f   : > { %1409 = vst [vmem:[%s2580_s23] sm:$0xff] %v1393_v53  ;;  %1976 = vrsqrt.f32 %v2574_v56  ;;  %v1379_v4 = vmul.f32 %v1285_v55, %v1251_v49  ;;  %v1294_v6 = vmul.f32 %v1967_v62, %v2483_v2  ;;  %v1312_v13 = vand.u32 2147483648, %v2509_v16  ;;  %v2603_v15 = vpop.f32.mrb[11].mxu0  ;;  %v1257_v55 = vld [vmem:[%s2516_s19 + $0x40] sm:$0xff] }
 0x150   : > { %v1396_v58 = vadd.f32 %v1380_v0, %v2496_v8  ;;  %1978 = vrsqrt.f32 %v2586_v1  ;;  %v1303_v9 = vsel %vm1302_vm9, %v2473_v63, %v1301_v3  ;;  %v1811_v10 = vpop.f32.mrb[12].mxu1  ;;  %v988_v32 = vadd.f32 %v1757_v57, %v2469_v59 }
 0x151   : > { %v1969_v17 = vpop.eup %1968  ;;  %v1395_v18 = vadd.f32 %v1379_v4, %v2504_v14  ;;  %v1306_v8 = vsel %vm1304_vm10, %v1305_v19, %v1303_v9  ;;  %v2611_v20 = vadd.f32 %v1811_v10, %v2448_v46  ;;  %v1296_v21 = vsel %vm1295_vm11, %v2483_v2, %v1294_v6  ;;  %v1230_v24 = vpop.f32.mrb[13].mxu1 }
 0x152   : > { %v1971_v25 = vpop.eup %1970  ;;  %1412 = vst [vmem:[%s2580_s23 + $0x18] sm:$0xff] %v1396_v58  ;;  %v1382_v26 = vmul.f32 %v1306_v8, %v1254_v5  ;;  %v1299_v14 = vsel %vm1297_vm12, %v1298_v28, %v1296_v21  ;;  %v2622_v63 = vadd.f32 %v2448_v46, %v1230_v24  ;;  %v1315_v19 = vmul.f32 %v1969_v17, %v2501_v12  ;;  %v2630_v34 = vpop.f32.mrb[12].mxu0  ;;  %v1260_v58 = vld [vmem:[%s2516_s19 + $0x58] sm:$0xff]  ;;  %v1259_v8 = vld [vmem:[%s2516_s19 + $0x50] sm:$0xff] }
 0x153   : > { %1411 = vst [vmem:[%s2580_s23 + $0x10] sm:$0xff] %v1395_v18  ;;  %1980 = vrsqrt.f32 %v2611_v20  ;;  %v1381_v27 = vmul.f32 %v1299_v14, %v1253_v11  ;;  %v1308_v31 = vmul.f32 %v1971_v25, %v2509_v16  ;;  %vm1330_vm1 = vcmp.eq.f32.partialorder %v2541_v33, inf  ;;  %v2639_v38 = vpop.f32.mrb[13].mxu0 }
 0x154   : > { %v1398_v2 = vadd.f32 %v1382_v26, %v2521_v22  ;;  %1982 = vrsqrt.f32 %v2622_v63  ;;  %v1317_v28 = vsel %vm1316_vm13, %v2501_v12, %v1315_v19  ;;  %v1814_v35 = vpop.f32.mrb[14].mxu1  ;;  %vm1332_vm2 = vcmp.eq.f32.partialorder %v2541_v33, 0.0  ;;  %v1262_v19 = vld [vmem:[%s2516_s19 + $0x68] sm:$0xff] }
 0x155   : > { %v1973_v39 = vpop.eup %1972  ;;  %v1397_v50 = vadd.f32 %v1381_v27, %v2525_v23  ;;  %v1320_v22 = vsel %vm1318_vm14, %v1319_v36, %v1317_v28  ;;  %v2647_v41 = vadd.f32 %v1814_v35, %v2448_v46  ;;  %v1310_v42 = vsel %vm1309_vm15, %v2509_v16, %v1308_v31  ;;  %v1240_v43 = vpop.f32.mrb[15].mxu1  ;;  %v1261_v35 = vld [vmem:[%s2516_s19 + $0x60] sm:$0xff] }
 0x156   : > { %v1975_v57 = vpop.eup %1974  ;;  %1414 = vst [vmem:[%s2580_s23 + $0x28] sm:$0xff] %v1398_v2  ;;  %v1384_v45 = vmul.f32 %v1320_v22, %v1256_v30  ;;  %v1313_v47 = vsel %vm1311_vm0, %v1312_v13, %v1310_v42  ;;  %v2656_v23 = vadd.f32 %v2448_v46, %v1240_v43  ;;  %v1329_v12 = vmul.f32 %v1973_v39, %v2541_v33  ;;  %v2664_v52 = vpop.f32.mrb[14].mxu0 }
 0x157   : > { %1413 = vst [vmem:[%s2580_s23 + $0x20] sm:$0xff] %v1397_v50  ;;  %1984 = vrsqrt.f32 %v2647_v41  ;;  %v1383_v36 = vmul.f32 %v1313_v47, %v1255_v37  ;;  %v1333_v49 = vand.u32 2147483648, %v2541_v33  ;;  %v983_v53 = vadd.f32 %v2469_v59, %v2568_v51  ;;  %v2673_v60 = vpop.f32.mrb[15].mxu0 }
 0x158   : > { %v1400_v16 = vadd.f32 %v1384_v45, %v2536_v29  ;;  %v1331_v46 = vsel %vm1330_vm1, %v2541_v33, %v1329_v12  ;;  %v1322_v54 = vmul.f32 %v1975_v57, %v2551_v40  ;;  %1986 = vrsqrt.f32 %v2656_v23  ;;  %v1264_v45 = vld [vmem:[%s2516_s19 + $0x78] sm:$0xff] }
 0x159   : > { %v1977_v61 = vpop.eup %1976  ;;  %v1399_v62 = vadd.f32 %v1383_v36, %v2559_v44  ;;  %v1334_v0 = vsel %vm1332_vm2, %v1333_v49, %v1331_v46  ;;  %vm1323_vm3 = vcmp.eq.f32.partialorder %v2551_v40, inf  ;;  %vm1325_vm4 = vcmp.eq.f32.partialorder %v2551_v40, 0.0 }
 0x15a   : > { %v1979_v29 = vpop.eup %1978  ;;  %1416 = vst [vmem:[%s2580_s23 + $0x38] sm:$0xff] %v1400_v16  ;;  %v1386_v33 = vmul.f32 %v1334_v0, %v1258_v48  ;;  %v1324_v3 = vsel %vm1323_vm3, %v2551_v40, %v1322_v54  ;;  %v1326_v51 = vand.u32 2147483648, %v2551_v40  ;;  %v998_v44 = vadd.f32 %v2594_v7, %v2469_v59  ;;  %v1263_v16 = vld [vmem:[%s2516_s19 + $0x70] sm:$0xff]  ;;  %s2100_s19 = smov [#allocation5]  }
 0x15b   : > { %1415 = vst [vmem:[%s2580_s23 + $0x30] sm:$0xff] %v1399_v62  ;;  %v1343_v4 = vmul.f32 %v1977_v61, %v2574_v56  ;;  %vm1344_vm5 = vcmp.eq.f32.partialorder %v2574_v56, inf  ;;  %vm1346_vm6 = vcmp.eq.f32.partialorder %v2574_v56, 0.0  ;;  %v1347_v9 = vand.u32 2147483648, %v2574_v56  ;;  %s1992_s10 = sshll.u32 %s2100_s19, 4  ;;  %s1993_s10 = int_to_ptr.vmem [resolvable:$false] %s1992_s10 }
 0x15c   : > { %v1402_v5 = vadd.f32 %v1386_v33, %v988_v32  ;;  %v1327_v6 = vsel %vm1325_vm4, %v1326_v51, %v1324_v3  ;;  %v1336_v10 = vmul.f32 %v1979_v29, %v2586_v1  ;;  %v993_v7 = vadd.f32 %v2469_v59, %v2603_v15  ;;  %s1994_s15 = scalar_lea.vmem %s1993_s10, 4096  ;;  %p1995_p9 = scmp.lt.s32.totalorder %s2741_s14, %s1993_s10 }
 0x15d   : > { %v1981_v40 = vpop.eup %1980  ;;  %v1385_v11 = vmul.f32 %v1327_v6, %v1257_v55  ;;  %v1345_v13 = vsel %vm1344_vm5, %v2574_v56, %v1343_v4  ;;  %vm1337_vm7 = vcmp.eq.f32.partialorder %v2586_v1, inf  ;;  %vm1339_vm8 = vcmp.eq.f32.partialorder %v2586_v1, 0.0  ;;  %p1996_p10 = scmp.lt.s32.totalorder %s1994_s15, %s1988_s22 }
 0x15e   : > { %v1983_v17 = vpop.eup %1982  ;;  %1418 = vst [vmem:[%s2580_s23 + $0x48] sm:$0xff] %v1402_v5  ;;  %v1348_v18 = vsel %vm1346_vm6, %v1347_v9, %v1345_v13  ;;  %v1338_v21 = vsel %vm1337_vm7, %v2586_v1, %v1336_v10  ;;  %v1340_v24 = vand.u32 2147483648, %v2586_v1  ;;  %v1008_v56 = vadd.f32 %v2630_v34, %v2469_v59 }
 0x15f   : > { %v1401_v25 = vadd.f32 %v1385_v11, %v983_v53  ;;  %v1388_v26 = vmul.f32 %v1348_v18, %v1260_v58  ;;  %v1357_v15 = vmul.f32 %v1981_v40, %v2611_v20  ;;  %vm1358_vm9 = vcmp.eq.f32.partialorder %v2611_v20, inf  ;;  %p1997_p12 = por %p1996_p10, %p1995_p9 }
 0x160   : > { %v1341_v14 = vsel %vm1339_vm8, %v1340_v24, %v1338_v21  ;;  %vm1360_vm10 = vcmp.eq.f32.partialorder %v2611_v20, 0.0  ;;  %v1361_v27 = vand.u32 2147483648, %v2611_v20  ;;  %v1350_v34 = vmul.f32 %v1983_v17, %v2622_v63 }
 0x161   : > { %v1985_v30 = vpop.eup %1984  ;;  %1417 = vst [vmem:[%s2580_s23 + $0x40] sm:$0xff] %v1401_v25  ;;  %v1404_v1 = vadd.f32 %v1388_v26, %v998_v44  ;;  %v1387_v31 = vmul.f32 %v1341_v14, %v1259_v8  ;;  %v1359_v32 = vsel %vm1358_vm9, %v2611_v20, %v1357_v15  ;;  %v1003_v28 = vadd.f32 %v2469_v59, %v2639_v38  ;;  %p1998_p0 = pnand %p1997_p12, %p1991_p8 }
 0x162   : > { %v1362_v2 = vsel %vm1360_vm10, %v1361_v27, %v1359_v32  ;;  %vm1351_vm11 = vcmp.eq.f32.partialorder %v2622_v63, inf  ;;  %v1354_v37 = vand.u32 2147483648, %v2622_v63  ;;  %v1987_v39 = vpop.eup %1986  ;;  %vm1353_vm12 = vcmp.eq.f32.partialorder %v2622_v63, 0.0 }
 0x163   : > { %1420 = vst [vmem:[%s2580_s23 + $0x58] sm:$0xff] %v1404_v1  ;;  %v1403_v50 = vadd.f32 %v1387_v31, %v993_v7  ;;  %v1390_v22 = vmul.f32 %v1362_v2, %v1262_v19  ;;  %v1352_v20 = vsel %vm1351_vm11, %v2622_v63, %v1350_v34  ;;  %v1371_v38 = vmul.f32 %v1985_v30, %v2647_v41 }
 0x164   : > { %v1355_v42 = vsel %vm1353_vm12, %v1354_v37, %v1352_v20  ;;  %vm1372_vm13 = vcmp.eq.f32.partialorder %v2647_v41, inf  ;;  %v1375_v47 = vand.u32 2147483648, %v2647_v41  ;;  %v1018_v12 = vadd.f32 %v2664_v52, %v2469_v59 }
 0x165   : > { %1419 = vst [vmem:[%s2580_s23 + $0x50] sm:$0xff] %v1403_v50  ;;  %v1406_v43 = vadd.f32 %v1390_v22, %v1008_v56  ;;  %v1389_v57 = vmul.f32 %v1355_v42, %v1261_v35  ;;  %v1373_v63 = vsel %vm1372_vm13, %v2647_v41, %v1371_v38  ;;  %vm1374_vm14 = vcmp.eq.f32.partialorder %v2647_v41, 0.0 }
 0x166   : > { %v1364_v36 = vmul.f32 %v1987_v39, %v2656_v23  ;;  %v1376_v49 = vsel %vm1374_vm14, %v1375_v47, %v1373_v63  ;;  %vm1365_vm15 = vcmp.eq.f32.partialorder %v2656_v23, inf  ;;  %v1368_v46 = vand.u32 2147483648, %v2656_v23 }
 0x167   : > { %1422 = vst [vmem:[%s2580_s23 + $0x68] sm:$0xff] %v1406_v43  ;;  %v1405_v48 = vadd.f32 %v1389_v57, %v1003_v28  ;;  %v1392_v52 = vmul.f32 %v1376_v49, %v1264_v45  ;;  %v1013_v53 = vadd.f32 %v2469_v59, %v2673_v60  ;;  %vm1367_vm0 = vcmp.eq.f32.partialorder %v2656_v23, 0.0 }
 0x168   : > { %v1366_v41 = vsel %vm1365_vm15, %v2656_v23, %v1364_v36 }
 0x169   : > { %1421 = vst [vmem:[%s2580_s23 + $0x60] sm:$0xff] %v1405_v48  ;;  %v1369_v54 = vsel %vm1367_vm0, %v1368_v46, %v1366_v41  ;;  %v1408_v61 = vadd.f32 %v1392_v52, %v1018_v12 }
 0x16a   : > { %v1391_v62 = vmul.f32 %v1369_v54, %v1263_v16 }
 0x16b   : > { %1424 = vst [vmem:[%s2580_s23 + $0x78] sm:$0xff] %v1408_v61 }
 0x16c   : > { %v1407_v59 = vadd.f32 %v1391_v62, %v1013_v53 }
 0x16e   : > { %1423 = vst [vmem:[%s2580_s23 + $0x70] sm:$0xff] %v1407_v59 }
 0x16f   : > { %2001 = shalt.err (!%p1998_p0)
}
 0x170   : > { %s2002_s7 = scalar_lea.hbm %s2746_s29, 2048  ;;  %s2006_s21 = scalar_lea.hbm %s2833_s28, 8192 }
 0x171   : > { %p2003_p1 = scmp.ne.s32.totalorder %s2746_s29, %s2002_s7  ;;  %p2007_p4 = scmp.lt.u32.totalorder %s2746_s29, %s2833_s28 }
 0x172   : > { %p2008_p5 = scmp.lt.u32.totalorder %s2006_s21, %s2002_s7  ;;  %p2010_p7 = scmp.lt.u32.totalorder %s2002_s7, %s2746_s29 }
 0x173   : > { %p2004_p2 = pnand %p2003_p1, %p2243_p11 }
 0x174   : > { %p2009_p6 = por %p2008_p5, %p2007_p4 }
 0x175   : > { %p2005_p3 = pneg %p2004_p2 }
 0x176   : > { %p2011_p8 = por %p2010_p7, %p2009_p6 }
 0x178   : > { %p2012_p9 = pnand %p2011_p8, %p2005_p3 }
 0x17a   : > { %2015 = shalt.err (!%p2012_p9)
}
 0x17b   : > { %s2101_s22 = smov 128   ;;  %s2102_s10 = smov 256  }
 0x17c   : > { %s2103_s15 = smov 8  }
 0x17d   : > { %1866 = dma.vmem_to_hbm [thread:$0]  (%p2243_p11), %s2741_s14, 2048, %s2746_s29, %s2752_s20, %s2101_s22, %s2102_s10, %s2103_s15  }
 0x17e PF: > { %p1872_p10 = scmp.ge.s32.totalorder %s2098_s18, 2  ;;  %s1456_s23 = sand.u32 1, %s2062_s30  }
 0x17f   : > { %s1457_s7 = scalar_lea.sflag [#allocation6], %s1456_s23 }
 0x180   : > { %p1869_p12 = pnand %p1872_p10, %p2250_p13 }
 0x182   : > { %2057 = dma.done.wait (!%p1869_p12), %s1457_s7, 2048  }
 0x183   : > { %2059 = vsyncadd (!%p1869_p12), %s1457_s7, 4294965248  ;;  %s22_s18 = sadd.s32 1, %s2098_s18   ;;  %s2834_s9 = sld [smem:[#allocation10_spill]] }
 0x184   : > { %p19_p0 = scmp.ge.s32.totalorder %s22_s18, 6   ;;  %s2835_s29 = sld [smem:[#allocation8_spill]] }
 0x185   : > { %s2836_s20 = sld [smem:[#allocation9_spill]]  ;;  %s2837_s30 = smov %s2074_s12 }
 0x186   : > { %s2838_s10 = smov %s2070_s11  ;;  %s2839_s11 = smov %s2230_s27 }
 0x187   : > { %s2840_s12 = smov %s2078_s13  ;;  %s2842_s14 = smov %s2090_s16 }
 0x188   : > { %s2843_s15 = smov %s2094_s17  ;;  %21 = sbr.rel (!%p19_p0) target bundleno = 9 (0x9), region = 238 }
 0x189   : > { %s2841_s13 = smov %s2834_s9 }
 0x18a   : > { %s2844_s16 = smov %s2835_s29 }
 0x18b   : > { %s2845_s17 = smov %s2836_s20 }
 0x18f   :  { %1462 = vsyncpa [#allocation6], 1 }
 0x190   :  { %1464 = vsyncpa [#allocation6 + $0x1], 1 }

</bundles_post_ra>
